<compile_context>
chip_gen: v6e
topology: v6e:2x2x1
jax: 0.10.0
libtpu: 0.0.40
codegen_flags: <defaults>
</compile_context>

<pallas_src>
import functools

import jax
import jax.numpy as jnp
from jax import lax
from jax.experimental import pallas as pl
from jax.experimental.pallas import tpu as pltpu


# ---------------------------------------------------------------------------
# shared math helpers (used by both the kernel and the pure-JAX reference)
# ---------------------------------------------------------------------------
def _entmax_power(t, alpha):
    """t^(1/(alpha-1)) for t >= 0, with an integer-exponent VPU fast path.

    Tolerance-based integer detection (not float ==) so e.g. alpha=1.5 -> t*t and
    alpha=4/3 -> t*t*t stay on the VPU instead of exp/log on the single-slot EUP.
    """
    exponent = 1.0 / (alpha - 1.0)
    k = int(round(exponent))
    if abs(exponent - k) < 1e-6 and 1 <= k <= 4:
        out = t
        for _ in range(k - 1):
            out = out * t
        return out
    return jnp.power(t, exponent)


def _pick_tile(n, max_tile):
    """Largest tile <= max_tile that evenly divides n (multiple of 8 unless it is n)."""
    if n <= max_tile:
        return n
    for t in range(max_tile, 0, -1):
        if n % t == 0 and (t % 8 == 0 or t == n):
            return t
    return n


# ---------------------------------------------------------------------------
# projection kernel: y = (x @ W + b) * scale, bf16 MXU inputs / f32 accumulation
# ---------------------------------------------------------------------------
def _linear_kernel(x_ref, w_ref, b_ref, o_ref, *, scale):
    x = x_ref[...].astype(jnp.bfloat16)
    w = w_ref[...].astype(jnp.bfloat16)
    acc = jnp.dot(x, w, preferred_element_type=jnp.float32) + b_ref[...]
    if scale != 1.0:
        acc = acc * scale          # scale folded here: touches (*, D), not (*, Sk)
    o_ref[...] = acc.astype(o_ref.dtype)


def _linear_project(x, w, b, *, scale=1.0, out_dtype=jnp.bfloat16, m_tile=512):
    M, Din = x.shape
    Dout = w.shape[1]
    tm = _pick_tile(M, m_tile)
    return pl.pallas_call(
        functools.partial(_linear_kernel, scale=scale),
        out_shape=jax.ShapeDtypeStruct((M, Dout), out_dtype),
        grid=(M // tm,),
        in_specs=[
            pl.BlockSpec((tm, Din), lambda i: (i, 0)),
            pl.BlockSpec((Din, Dout), lambda i: (0, 0)),   # weights resident
            pl.BlockSpec((1, Dout), lambda i: (0, 0)),     # bias resident
        ],
        out_specs=pl.BlockSpec((tm, Dout), lambda i: (i, 0)),
        compiler_params=pltpu.CompilerParams(dimension_semantics=("parallel",)),
    )(x, w, b)


# ---------------------------------------------------------------------------
# attention kernel: scores -> alpha-entmax (bisection) -> context
# ---------------------------------------------------------------------------
def _sparse_attention_kernel(q_ref, k_ref, v_ref, ctx_ref, attn_ref=None, *,
                             alpha, n_iter):
    # q_ref: (TQ, D) bf16 (already scaled by 1/sqrt(D)); k_ref/v_ref: (Sk, D) bf16.
    q = q_ref[...]
    k = k_ref[...]
    v = v_ref[...]

    # scores = q @ k^T without materializing k.T: contract feature dims directly on MXU.
    scores = lax.dot_general(q, k, (((1,), (1,)), ((), ())),
                             preferred_element_type=jnp.float32)

    # TODO(synk): optional `mask` argument (masked_fill(mask==0, -1e9)) not plumbed through.

    # ---- alpha-entmax along the last dim via bisection (kept in f32) ----
    x = scores - jnp.max(scores, axis=-1, keepdims=True)     # row max -> 0
    # Bracket [max-1, max] == [-1, 0]: err(tau_lo) >= 0 >= err(tau_hi).
    tau_hi0 = jnp.zeros((x.shape[0], 1), jnp.float32)
    tau_lo0 = tau_hi0 - 1.0

    def p_of(tau):
        return _entmax_power(jnp.maximum(x - tau, 0.0), alpha)

    def body(_, carry):
        tl, tr = carry
        tm = (tl + tr) * 0.5
        err = jnp.sum(p_of(tm), axis=-1, keepdims=True) - 1.0
        tl = jnp.where(err > 0, tm, tl)
        tr = jnp.where(err <= 0, tm, tr)
        return tl, tr

    tl, tr = lax.fori_loop(0, n_iter, body, (tau_lo0, tau_hi0), unroll=2)
    attn = p_of((tl + tr) * 0.5)                              # (TQ, Sk) f32, rows sum to 1

    # TODO(synk): nn.Dropout(p=0.1) is identity in eval mode; training-mode dropout not applied.

    ctx = jnp.dot(attn.astype(jnp.bfloat16), v, preferred_element_type=jnp.float32)

    ctx_ref[...] = ctx.astype(ctx_ref.dtype)
    if attn_ref is not None:
        attn_ref[...] = attn.astype(attn_ref.dtype)


def sparse_attention(query, key, value, params, *, alpha=1.5, n_iter=30,
                     q_tile=256, return_attn=True):
    """query/key/value: (B, S, D) f32.

    Returns (context (B,Sq,D) f32, attn (B,Sq,Sk) f32), or just context when
    return_attn=False (skips the largest HBM write).
    """
    B, Sq, D = query.shape
    Sk = key.shape[1]
    wq, bq, wk, bk, wv, bv = params
    scale = 1.0 / (D ** 0.5)

    # Projections hoisted out of the attention grid and batched over B*S rows.
    q = _linear_project(query.reshape(B * Sq, D), wq, bq, scale=scale).reshape(B, Sq, D)
    k = _linear_project(key.reshape(B * Sk, D), wk, bk).reshape(B, Sk, D)
    v = _linear_project(value.reshape(B * Sk, D), wv, bv).reshape(B, Sk, D)

    TQ = _pick_tile(Sq, q_tile)
    grid = (B, Sq // TQ)

    in_specs = [
        pl.BlockSpec((None, TQ, D), lambda b, i: (b, i, 0)),   # q tile (leading dim squeezed)
        pl.BlockSpec((None, Sk, D), lambda b, i: (b, 0, 0)),   # k: resident across q tiles
        pl.BlockSpec((None, Sk, D), lambda b, i: (b, 0, 0)),   # v: resident across q tiles
    ]
    out_shape = [jax.ShapeDtypeStruct((B, Sq, D), jnp.float32)]
    out_specs = [pl.BlockSpec((None, TQ, D), lambda b, i: (b, i, 0))]
    if return_attn:
        out_shape.append(jax.ShapeDtypeStruct((B, Sq, Sk), jnp.float32))
        out_specs.append(pl.BlockSpec((None, TQ, Sk), lambda b, i: (b, i, 0)))

    # VMEM budget: double-buffered blocks + (TQ, Sk) f32 temporaries of the entmax loop.
    slab = TQ * Sk * 4
    est = (2 * TQ * D * 2 + 4 * Sk * D * 2 + 2 * TQ * D * 4
           + (2 * slab if return_attn else 0) + 6 * slab)
    vmem_limit = int(min(max(2 * est, 32 << 20), 64 << 20))   # headroom, v7x-safe cap

    outs = pl.pallas_call(
        functools.partial(_sparse_attention_kernel, alpha=alpha, n_iter=n_iter),
        out_shape=tuple(out_shape),
        grid=grid,
        in_specs=in_specs,
        out_specs=tuple(out_specs),
        compiler_params=pltpu.CompilerParams(
            dimension_semantics=("parallel", "parallel"),
            vmem_limit_bytes=vmem_limit),
    )(q, k, v)

    if return_attn:
        ctx, attn = outs
        return ctx, attn
    (ctx,) = outs
    return ctx


# ---------------------------------------------------------------------------
# pure-JAX reference (mirrors the kernel's bf16-matmul / f32-entmax math)
# ---------------------------------------------------------------------------
def _linear_ref(x, w, b, scale=1.0):
    acc = jnp.dot(x.astype(jnp.bfloat16), w.astype(jnp.bfloat16),
                  preferred_element_type=jnp.float32) + b
    if scale != 1.0:
        acc = acc * scale
    return acc.astype(jnp.bfloat16)


def _entmax_bisect_ref(scores, alpha, n_iter):
    x = scores - jnp.max(scores, axis=-1, keepdims=True)
    tr = jnp.zeros(x.shape[:-1] + (1,), jnp.float32)
    tl = tr - 1.0
    for _ in range(n_iter):
        tm = (tl + tr) * 0.5
        p = _entmax_power(jnp.maximum(x - tm, 0.0), alpha)
        err = jnp.sum(p, axis=-1, keepdims=True) - 1.0
        tl = jnp.where(err > 0, tm, tl)
        tr = jnp.where(err <= 0, tm, tr)
    return _entmax_power(jnp.maximum(x - (tl + tr) * 0.5, 0.0), alpha)


def _reference(query, key, value, params, alpha=1.5, n_iter=30):
    wq, bq, wk, bk, wv, bv = params
    B, Sq, D = query.shape
    Sk = key.shape[1]
    scale = 1.0 / (D ** 0.5)
    q = _linear_ref(query.reshape(-1, D), wq, bq, scale).reshape(B, Sq, D)
    k = _linear_ref(key.reshape(-1, D), wk, bk).reshape(B, Sk, D)
    v = _linear_ref(value.reshape(-1, D), wv, bv).reshape(B, Sk, D)
    scores = jnp.einsum("bqd,bkd->bqk", q, k, preferred_element_type=jnp.float32)
    attn = _entmax_bisect_ref(scores, alpha, n_iter)
    ctx = jnp.einsum("bqk,bkd->bqd", attn.astype(jnp.bfloat16), v,
                     preferred_element_type=jnp.float32)
    return ctx, attn


if __name__ == "__main__":
    B, S, D = 2, 8, 32
    alpha = 1.5
    n_iter = 30   # bisection interval is length 1; 30 halvings are past f32 tau resolution

    key0 = jax.random.PRNGKey(0)
    ks = jax.random.split(key0, 9)
    # Deterministic synthetic parameters (nn.Linear(d_model, d_model) x3), stored as (in, out).
    init = 1.0 / (D ** 0.5)
    wq = jax.random.uniform(ks[0], (D, D), jnp.float32, -init, init)
    bq = jax.random.uniform(ks[1], (1, D), jnp.float32, -init, init)
    wk = jax.random.uniform(ks[2], (D, D), jnp.float32, -init, init)
    bk = jax.random.uniform(ks[3], (1, D), jnp.float32, -init, init)
    wv = jax.random.uniform(ks[4], (D, D), jnp.float32, -init, init)
    bv = jax.random.uniform(ks[5], (1, D), jnp.float32, -init, init)
    params = (wq, bq, wk, bk, wv, bv)

    query = jax.random.normal(ks[6], (B, S, D), jnp.float32)
    key_t = jax.random.normal(ks[7], (B, S, D), jnp.float32)
    value = jax.random.normal(ks[8], (B, S, D), jnp.float32)

    ctx, attn = sparse_attention(query, key_t, value, params, alpha=alpha, n_iter=n_iter)
    jax.block_until_ready((ctx, attn))

    ctx_ref, attn_ref = _reference(query, key_t, value, params, alpha=alpha, n_iter=n_iter)
    assert jnp.allclose(ctx, ctx_ref, atol=5e-3, rtol=5e-3), "context mismatch"
    assert jnp.allclose(attn, attn_ref, atol=5e-3, rtol=5e-3), "attn mismatch"
    # entmax rows must form a (possibly sparse) probability distribution
    assert jnp.allclose(attn.sum(-1), 1.0, atol=1e-3), "entmax rows do not sum to 1"

    # ctx-only entry point (skips the (B, Sq, Sk) attn HBM write — main mem-side win on v5e).
    ctx_only = sparse_attention(query, key_t, value, params, alpha=alpha,
                                n_iter=n_iter, return_attn=False)
    jax.block_until_ready(ctx_only)
    assert jnp.allclose(ctx_only, ctx, atol=1e-4, rtol=1e-4), "ctx-only path mismatch"

    print("KERNEL_OK")
</pallas_src>

<mosaic_0001>
module attributes {stable_mosaic.version = 11 : i64} {
  func.func @_linear_kernel(%arg0: i32, %arg1: memref<16x32xf32, #tpu.memory_space<vmem>>, %arg2: memref<32x32xf32, #tpu.memory_space<vmem>>, %arg3: memref<1x32xf32, #tpu.memory_space<vmem>>, %arg4: memref<16x32xbf16, #tpu.memory_space<vmem>>) attributes {dimension_semantics = [#tpu.dimension_semantics<parallel>], iteration_bounds = array<i64: 1>, scalar_prefetch = 0 : i64, scratch_operands = 0 : i64, tpu.core_type = #tpu.core_type<tc>, window_params = [{transform_indices = @transform_0, window_bounds = array<i64: 16, 32>}, {pipeline_mode = #tpu.pipeline_mode<synchronous>, transform_indices = @transform_1, window_bounds = array<i64: 32, 32>}, {pipeline_mode = #tpu.pipeline_mode<synchronous>, transform_indices = @transform_2, window_bounds = array<i64: 1, 32>}, {transform_indices = @transform_3, window_bounds = array<i64: 16, 32>}]} {
    %c0 = arith.constant 0 : index
    %c0_0 = arith.constant 0 : index
    %0 = vector.load %arg1[%c0, %c0_0] : memref<16x32xf32, #tpu.memory_space<vmem>>, vector<16x32xf32>
    %1 = arith.truncf %0 : vector<16x32xf32> to vector<16x32xbf16>
    %c0_1 = arith.constant 0 : index
    %c0_2 = arith.constant 0 : index
    %2 = vector.load %arg2[%c0_1, %c0_2] : memref<32x32xf32, #tpu.memory_space<vmem>>, vector<32x32xf32>
    %3 = arith.truncf %2 : vector<32x32xf32> to vector<32x32xbf16>
    %cst = arith.constant dense<0.000000e+00> : vector<16x32xf32>
    %4 = tpu.matmul %1, %3, %cst {dimension_numbers = #tpu.dot_dimension_numbers<[1], [0], [0], [1], [0, 0, 1, 1], [], []>} : vector<16x32xbf16>, vector<32x32xbf16>, vector<16x32xf32> -> vector<16x32xf32>
    %c0_3 = arith.constant 0 : index
    %c0_4 = arith.constant 0 : index
    %5 = vector.load %arg3[%c0_3, %c0_4] : memref<1x32xf32, #tpu.memory_space<vmem>>, vector<1x32xf32>
    %6 = vector.broadcast %5 : vector<1x32xf32> to vector<16x32xf32>
    %7 = arith.addf %4, %6 : vector<16x32xf32>
    %cst_5 = arith.constant 0.176776692 : f32
    %8 = vector.broadcast %cst_5 : f32 to vector<16x32xf32>
    %9 = arith.mulf %7, %8 : vector<16x32xf32>
    %10 = arith.truncf %9 : vector<16x32xf32> to vector<16x32xbf16>
    %c0_6 = arith.constant 0 : index
    %c0_7 = arith.constant 0 : index
    %11 = vector.load %arg4[%c0_6, %c0_7] : memref<16x32xbf16, #tpu.memory_space<vmem>>, vector<16x32xbf16>
    tpu.vector_store %arg4[%c0_6, %c0_7], %10 {strides = array<i32>} : memref<16x32xbf16, #tpu.memory_space<vmem>>, vector<16x32xbf16>,
    return
  }
  func.func @transform_0(%arg0: i32) -> (i32, i32) {
    %c0_i32 = arith.constant 0 : i32
    %c0_i32_0 = arith.constant 0 : i32
    return %arg0, %c0_i32 : i32, i32
  }
  func.func @transform_1(%arg0: i32) -> (i32, i32) {
    %c0_i32 = arith.constant 0 : i32
    %c0_i32_0 = arith.constant 0 : i32
    %c0_i32_1 = arith.constant 0 : i32
    return %c0_i32, %c0_i32_0 : i32, i32
  }
  func.func @transform_2(%arg0: i32) -> (i32, i32) {
    %c0_i32 = arith.constant 0 : i32
    %c0_i32_0 = arith.constant 0 : i32
    %c0_i32_1 = arith.constant 0 : i32
    return %c0_i32, %c0_i32_0 : i32, i32
  }
  func.func @transform_3(%arg0: i32) -> (i32, i32) {
    %c0_i32 = arith.constant 0 : i32
    %c0_i32_0 = arith.constant 0 : i32
    return %arg0, %c0_i32 : i32, i32
  }
}

</mosaic_0001>

<bundles_post_ra>
// kernel: tpu_custom_call.1
= control target key start
LH: loop header
LB: loop body
LE: loop exit
PB: predicated region body
PF: predicated region fallthrough
CT: control target
= control target key end

     0   :  { %8 = vsyncpa [#allocation3], 0  ;;  %s269_s0 = inlined_call_operand.hbm [shape: f32[16,32], index: 0, kind: input, shape index: {}]   ;;  %s270_s1 = inlined_call_operand.hbm [shape: f32[32,32], index: 1, kind: input, shape index: {}]   ;;  %s271_s2 = inlined_call_operand.vmem [shape: f32[1,32], index: 2, kind: input, shape index: {}]   ;;  %s272_s3 = inlined_call_operand.hbm [shape: bf16[16,32], index: 3, kind: output, shape index: {}]  }
   0x1   :  { %9 = vsyncpa [#allocation6], 0 }
   0x2   :  { %10 = vsyncpa [#allocation4], 0  ;;  %s228_s12 = smov [#allocation2]  }
   0x3   :  { %s16_s13 = sshll.u32 %s228_s12, 4  ;;  %s17_s13 = int_to_ptr.vmem [resolvable:$true] %s16_s13 }
   0x4   :  { %s170_s14 = scalar_lea.vmem %s17_s13, 256  ;;  %p175_p1 = scmp.lt.s32.totalorder %s17_s13, %s17_s13 }
   0x5   :  { %p171_p0 = scmp.ne.s32.totalorder %s17_s13, %s170_s14  ;;  %p176_p2 = scmp.lt.s32.totalorder %s170_s14, %s170_s14 }
   0x7   :  { %p177_p3 = por %p176_p2, %p175_p1 }
   0x9   :  { %p178_p4 = pnand %p177_p3, %p171_p0 }
   0xb   :  { %181 = shalt.err (!%p178_p4)
}
   0xc   :  { %s229_s15 = smov 128   ;;  %s230_s16 = smov 8  }
   0xd   :  { %22 = dma.hbm_to_vmem [thread:$0]  %s269_s0, 256, %s17_s13, [#allocation3], %s229_s15, %s229_s15, %s230_s16  }
   0xe   :  { %s231_s19 = smov [#allocation5]  }
   0xf   :  { %s28_s20 = sshll.u32 %s231_s19, 4  ;;  %s29_s20 = int_to_ptr.vmem [resolvable:$true] %s28_s20 }
  0x10   :  { %s190_s21 = scalar_lea.vmem %s29_s20, 512  ;;  %p195_p6 = scmp.lt.s32.totalorder %s29_s20, %s29_s20 }
  0x11   :  { %p191_p5 = scmp.ne.s32.totalorder %s29_s20, %s190_s21  ;;  %p196_p7 = scmp.lt.s32.totalorder %s190_s21, %s190_s21 }
  0x13   :  { %p197_p8 = por %p196_p7, %p195_p6 }
  0x15   :  { %p198_p9 = pnand %p197_p8, %p191_p5 }
  0x17   :  { %201 = shalt.err (!%p198_p9)
}
  0x18   :  { %34 = dma.hbm_to_vmem [thread:$0]  %s270_s1, 512, %s29_s20, [#allocation6], %s229_s15, %s229_s15, %s230_s16  }
  0x19   :  { %222 = dma.done.wait [#allocation3], 256  }
  0x1a   :  { %223 = vsyncadd [#allocation3], 4294967040 }
  0x1b   :  { %224 = dma.done.wait [#allocation6], 512  }
  0x1c   :  { %225 = vsyncadd [#allocation6], 4294966784  ;;  %v232_v0 = vmov 0.0   ;;  %vm233_vm0 = vmmov 0   ;;  %v49_v1 = vld [vmem:[#allocation5 + $0x10] sm:$0xff]  ;;  %v50_v2 = vld [vmem:[#allocation5 + $0x18] sm:$0xff] }
  0x1d   :  { %145 = vmatprep.subr.bf16.mxu0 %v232_v0  ;;  %149 = vmatprep.mubr.msk.bf16.mxu0 %vm233_vm0, %v232_v0  ;;  %v47_v3 = vld [vmem:[#allocation5] sm:$0xff]  ;;  %v52_v4 = vpack.c.bf16 %v50_v2, %v49_v1  ;;  %v48_v5 = vld [vmem:[#allocation5 + $0x8] sm:$0xff]  ;;  %v44_v7 = vld [vmem:[#allocation2] sm:$0xff]  ;;  %vm60_vm1 = vcmask 261120   ;;  %vm115_vm2 = vcmask 257024   ;;  %s234_s24 = smov [#allocation7]  }
  0x1e   :  { %v51_v6 = vpack.c.bf16 %v48_v5, %v47_v3  ;;  %v45_v8 = vld [vmem:[#allocation2 + $0x8] sm:$0xff]  ;;  %v136_v10 = vld [vmem:[%s271_s2] ss:$0 sm:$0xff]  ;;  %s123_s25 = sshll.u32 %s234_s24, 4  ;;  %s124_s25 = int_to_ptr.vmem [resolvable:$true] %s123_s25 }
  0x1f   :  { %146 = vmatpush3.bf16.msra.mxu0 %v52_v4  ;;  %v46_v9 = vpack.c.bf16 %v45_v8, %v44_v7  ;;  %s202_s26 = scalar_lea.vmem %s124_s25, 128  ;;  %p207_p11 = scmp.lt.s32.totalorder %s124_s25, %s124_s25 }
  0x20   :  { %147 = vmatprep.subr.bf16.mxu0 %v232_v0  ;;  %p203_p10 = scmp.ne.s32.totalorder %s124_s25, %s202_s26  ;;  %p208_p12 = scmp.lt.s32.totalorder %s202_s26, %s202_s26 }
  0x22   :  { %p209_p13 = por %p208_p12, %p207_p11 }
  0x23   :  { %148 = vmatpush3.bf16.msra.mxu0 %v51_v6 }
  0x24   :  { %p210_p0 = pnand %p209_p13, %p203_p10 }
  0x26   :  { %150 = vmatmul.mubr.msk.bf16.vlgmr.msra.gmra.mxu0 %vm60_vm1, %v46_v9 }
  0xe6   :  { %v98_v11 = vpop.f32.mrf.mxu0 }
  0xe7   :  { %v99_v12 = vadd.f32 %v136_v10, %v98_v11 }
  0xe8   :  { %v151_v13 = vpop.f32.mrf.mxu0 }
  0xe9   :  { %v105_v14 = vmul.f32 0.17677669, %v99_v12 }
  0xea   :  { %v101_v15 = vpop.f32.mrf.mxu0 }
  0xeb   :  { %v140_v16 = vpack.c.bf16 %v105_v14, %v105_v14  ;;  %v102_v17 = vadd.f32 %v136_v10, %v101_v15 }
  0xec   :  { %v152_v18 = vpop.f32.mrf.mxu0 }
  0xed   :  { %116 = vst.msk [vmem:[#allocation7] sm:$0xf] %vm115_vm2, %v140_v16  ;;  %v106_v19 = vmul.f32 0.17677669, %v102_v17 }
  0xef   :  { %v141_v20 = vpack.c.bf16 %v106_v19, %v106_v19 }
  0xf1   :  { %117 = vst.msk [vmem:[#allocation7 + $0x4] sm:$0xf] %vm115_vm2, %v141_v20 }
  0xf2   :  { %213 = shalt.err (!%p210_p0)
}
  0xf3   :  { %s235_s2 = smov 64   ;;  %s236_s27 = smov 4  }
  0xf4   :  { %129 = dma.vmem_to_hbm [thread:$0]  %s124_s25, 128, %s272_s3, [#allocation4], %s235_s2, %s235_s2, %s236_s27  }
  0xf5   :  { %226 = dma.done.wait [#allocation4], 128  }
  0xf6   :  { %227 = vsyncadd [#allocation4], 4294967168 }
  0xf7   :  { %133 = vsyncpa [#allocation3], 1 }
  0xf8   :  { %134 = vsyncpa [#allocation6], 1 }
  0xf9   :  { %135 = vsyncpa [#allocation4], 1 }

</bundles_post_ra>
